<compile_context>
chip_gen: v7x
topology: tpu7x:2x2x1
jax: 0.10.0
libtpu: 0.0.40
codegen_flags: <defaults>
</compile_context>

<pallas_src>
import jax
import jax.numpy as jnp
from jax.experimental import pallas as pl
from jax.experimental.pallas import tpu as pltpu

_LANE = 128
_MAX_ROW_TILE_4B = 1024   # 1024 x 128 x 4B = 512 KiB per input per buffer
_MAX_ROW_TILE_2B = 2048   # keep ~same byte size for 2-byte dtypes


def _bce_kernel(pred_ref, truth_ref, acc_ref):
    """Accumulate per-element BCE loss into a VMEM-resident output block.

    Grid = (splits, tiles_per_split). The output block index depends only on
    the (parallel) split axis, so the accumulator stays resident in VMEM
    across the (arbitrary) tile sweep; logs go to the EUP, adds/muls stay on
    the VPU, and no cross-lane reduction happens in the hot loop.
    """
    i = pl.program_id(1)

    @pl.when(i == 0)
    def _():
        acc_ref[...] = jnp.zeros_like(acc_ref)

    p = pred_ref[...].astype(jnp.float32)
    t = truth_ref[...].astype(jnp.float32)

    # torch.nn.BCELoss clamps the log terms at -100 for numerical stability.
    logp = jnp.maximum(jnp.log(p), jnp.float32(-100.0))
    log1mp = jnp.maximum(jnp.log(1.0 - p), jnp.float32(-100.0))
    acc_ref[...] += -(t * logp + (1.0 - t) * log1mp)


def bce_loss(predictions, truth):
    """Mean binary cross-entropy, matching torch.nn.BCELoss()(pred, truth)."""
    assert predictions.shape == truth.shape
    total_n = predictions.size

    itemsize = jnp.dtype(predictions.dtype).itemsize
    sub = 8 if itemsize >= 4 else (16 if itemsize == 2 else 32)
    max_rows = _MAX_ROW_TILE_2B if itemsize == 2 else _MAX_ROW_TILE_4B

    rows = pl.cdiv(total_n, _LANE)
    row_tile = min(max_rows, pl.cdiv(rows, sub) * sub)
    tiles = pl.cdiv(rows, row_tile)
    nsplit = 2 if tiles >= 2 else 1          # expose both TensorCores on v7x
    tiles_per_split = pl.cdiv(tiles, nsplit)
    padded_rows = nsplit * tiles_per_split * row_tile
    padded_len = padded_rows * _LANE

    pflat = predictions.reshape(-1)
    tflat = truth.reshape(-1)
    pad = padded_len - total_n
    if pad:
        # pred=1, truth=1 contributes exactly 0 loss (after the -100 clamp),
        # so padded elements do not perturb the sum.
        pflat = jnp.concatenate([pflat, jnp.ones((pad,), pflat.dtype)])
        tflat = jnp.concatenate([tflat, jnp.ones((pad,), tflat.dtype)])

    p3 = pflat.reshape(nsplit, tiles_per_split * row_tile, _LANE)
    t3 = tflat.reshape(nsplit, tiles_per_split * row_tile, _LANE)

    partials = pl.pallas_call(
        _bce_kernel,
        out_shape=jax.ShapeDtypeStruct((nsplit, row_tile, _LANE), jnp.float32),
        grid_spec=pltpu.PrefetchScalarGridSpec(
            num_scalar_prefetch=0,
            grid=(nsplit, tiles_per_split),
            in_specs=[
                pl.BlockSpec((1, row_tile, _LANE), lambda c, i: (c, i, 0)),
                pl.BlockSpec((1, row_tile, _LANE), lambda c, i: (c, i, 0)),
            ],
            out_specs=pl.BlockSpec((1, row_tile, _LANE), lambda c, i: (c, 0, 0)),
        ),
        compiler_params=pltpu.CompilerParams(
            dimension_semantics=("parallel", "arbitrary"),
        ),
    )(p3, t3)

    # Single (tiny) cross-lane reduce + mean, done once outside the hot loop.
    return jnp.sum(partials) / jnp.float32(total_n)


class Loss:
    """Mirror of the PyTorch Loss module: forward(pred, truth) -> BCELoss mean."""

    def __init__(self, config=None):
        self.config = config

    def __call__(self, predictions, truth):
        return bce_loss(predictions, truth)


if __name__ == "__main__":
    key = jax.random.PRNGKey(0)
    k1, k2 = jax.random.split(key)

    # Small NCHW shapes consistent with the module's forward.
    shape = (2, 4, 16, 16)
    # predictions are probabilities (as required by BCELoss)
    predictions = jax.nn.sigmoid(jax.random.normal(k1, shape, dtype=jnp.float32))
    truth = (jax.random.uniform(k2, shape) > 0.5).astype(jnp.float32)

    loss_mod = Loss(config=None)
    loss = loss_mod(predictions, truth)
    jax.block_until_ready(loss)

    # Sanity check against a pure-JAX reference of torch.nn.BCELoss semantics.
    logp = jnp.maximum(jnp.log(predictions), -100.0)
    log1mp = jnp.maximum(jnp.log(1.0 - predictions), -100.0)
    ref = jnp.mean(-(truth * logp + (1.0 - truth) * log1mp))
    assert jnp.allclose(loss, ref, rtol=1e-5, atol=1e-6), (loss, ref)

    print("KERNEL_OK")
</pallas_src>

<mosaic_0001>
module attributes {stable_mosaic.version = 11 : i64} {
  func.func @_bce_kernel(%arg0: i32, %arg1: i32, %arg2: memref<1x16x128xf32, #tpu.memory_space<vmem>>, %arg3: memref<1x16x128xf32, #tpu.memory_space<vmem>>, %arg4: memref<1x16x128xf32, #tpu.memory_space<vmem>>) attributes {dimension_semantics = [#tpu.dimension_semantics<parallel>, #tpu.dimension_semantics<arbitrary>], iteration_bounds = array<i64: 1, 1>, scalar_prefetch = 0 : i64, scratch_operands = 0 : i64, tpu.core_type = #tpu.core_type<tc>, window_params = [{transform_indices = @transform_0, window_bounds = array<i64: 1, 16, 128>}, {transform_indices = @transform_1, window_bounds = array<i64: 1, 16, 128>}, {transform_indices = @transform_2, window_bounds = array<i64: 1, 16, 128>}]} {
    %c0_i32 = arith.constant 0 : i32
    %0 = arith.cmpi eq, %arg1, %c0_i32 : i32
    %1 = arith.extui %0 : i1 to i32
    %c0_i32_0 = arith.constant 0 : i32
    %2 = arith.cmpi ne, %1, %c0_i32_0 : i32
    scf.if %2 {
      %cst_16 = arith.constant 0.000000e+00 : f32
      %23 = vector.broadcast %cst_16 : f32 to vector<1x16x128xf32>
      %c0_17 = arith.constant 0 : index
      %c0_18 = arith.constant 0 : index
      %c0_19 = arith.constant 0 : index
      %24 = vector.load %arg4[%c0_17, %c0_18, %c0_19] : memref<1x16x128xf32, #tpu.memory_space<vmem>>, vector<1x16x128xf32>
      tpu.vector_store %arg4[%c0_17, %c0_18, %c0_19], %23 {strides = array<i32>} : memref<1x16x128xf32, #tpu.memory_space<vmem>>, vector<1x16x128xf32>,
    } else {
    }
    %c0 = arith.constant 0 : index
    %c0_1 = arith.constant 0 : index
    %c0_2 = arith.constant 0 : index
    %3 = vector.load %arg2[%c0, %c0_1, %c0_2] : memref<1x16x128xf32, #tpu.memory_space<vmem>>, vector<1x16x128xf32>
    %c0_3 = arith.constant 0 : index
    %c0_4 = arith.constant 0 : index
    %c0_5 = arith.constant 0 : index
    %4 = vector.load %arg3[%c0_3, %c0_4, %c0_5] : memref<1x16x128xf32, #tpu.memory_space<vmem>>, vector<1x16x128xf32>
    %5 = math.log %3 : vector<1x16x128xf32>
    %cst = arith.constant -1.000000e+02 : f32
    %6 = vector.broadcast %cst : f32 to vector<1x16x128xf32>
    %7 = arith.maximumf %5, %6 : vector<1x16x128xf32>
    %cst_6 = arith.constant 1.000000e+00 : f32
    %8 = vector.broadcast %cst_6 : f32 to vector<1x16x128xf32>
    %9 = arith.subf %8, %3 : vector<1x16x128xf32>
    %10 = math.log %9 : vector<1x16x128xf32>
    %cst_7 = arith.constant -1.000000e+02 : f32
    %11 = vector.broadcast %cst_7 : f32 to vector<1x16x128xf32>
    %12 = arith.maximumf %10, %11 : vector<1x16x128xf32>
    %c0_8 = arith.constant 0 : index
    %c0_9 = arith.constant 0 : index
    %c0_10 = arith.constant 0 : index
    %13 = vector.load %arg4[%c0_8, %c0_9, %c0_10] : memref<1x16x128xf32, #tpu.memory_space<vmem>>, vector<1x16x128xf32>
    %14 = arith.mulf %4, %7 : vector<1x16x128xf32>
    %cst_11 = arith.constant 1.000000e+00 : f32
    %15 = vector.broadcast %cst_11 : f32 to vector<1x16x128xf32>
    %16 = arith.subf %15, %4 : vector<1x16x128xf32>
    %17 = arith.mulf %16, %12 : vector<1x16x128xf32>
    %18 = arith.addf %14, %17 : vector<1x16x128xf32>
    %cst_12 = arith.constant 0.000000e+00 : f32
    %19 = vector.broadcast %cst_12 : f32 to vector<1x16x128xf32>
    %20 = arith.subf %19, %18 : vector<1x16x128xf32>
    %21 = arith.addf %13, %20 : vector<1x16x128xf32>
    %c0_13 = arith.constant 0 : index
    %c0_14 = arith.constant 0 : index
    %c0_15 = arith.constant 0 : index
    %22 = vector.load %arg4[%c0_13, %c0_14, %c0_15] : memref<1x16x128xf32, #tpu.memory_space<vmem>>, vector<1x16x128xf32>
    tpu.vector_store %arg4[%c0_13, %c0_14, %c0_15], %21 {strides = array<i32>} : memref<1x16x128xf32, #tpu.memory_space<vmem>>, vector<1x16x128xf32>,
    return
  }
  func.func @transform_0(%arg0: i32, %arg1: i32) -> (i32, i32, i32) {
    %c0_i32 = arith.constant 0 : i32
    %c0_i32_0 = arith.constant 0 : i32
    return %arg0, %arg1, %c0_i32 : i32, i32, i32
  }
  func.func @transform_1(%arg0: i32, %arg1: i32) -> (i32, i32, i32) {
    %c0_i32 = arith.constant 0 : i32
    %c0_i32_0 = arith.constant 0 : i32
    return %arg0, %arg1, %c0_i32 : i32, i32, i32
  }
  func.func @transform_2(%arg0: i32, %arg1: i32) -> (i32, i32, i32) {
    %c0_i32 = arith.constant 0 : i32
    %c0_i32_0 = arith.constant 0 : i32
    %c0_i32_1 = arith.constant 0 : i32
    return %arg0, %c0_i32, %c0_i32_0 : i32, i32, i32
  }
}

</mosaic_0001>

<bundles_post_ra>
// kernel: tpu_custom_call.1
= control target key start
LH: loop header
LB: loop body
LE: loop exit
PB: predicated region body
PF: predicated region fallthrough
CT: control target
= control target key end

     0   :  { %7 = vsyncpa [#allocation3], 0  ;;  %s249_s0 = inlined_call_operand.hbm [shape: f32[1,16,128], index: 0, kind: input, shape index: {}]   ;;  %s250_s1 = inlined_call_operand.hbm [shape: f32[1,16,128], index: 1, kind: input, shape index: {}]   ;;  %s251_s2 = inlined_call_operand.hbm [shape: f32[1,16,128], index: 2, kind: output, shape index: {}]  }
   0x1   :  { %8 = vsyncpa [#allocation6], 0 }
   0x2   :  { %9 = vsyncpa [#allocation4], 0  ;;  %s184_s9 = smov [#allocation2]   ;;  %s112_s13 = scalar_lea.hbm %s249_s0, 256 }
   0x3   :  { %s15_s10 = sshll.u32 %s184_s9, 4  ;;  %p113_p0 = scmp.ne.s32.totalorder %s249_s0, %s112_s13  ;;  %s16_s10 = int_to_ptr.vmem [resolvable:$true] %s15_s10 }
   0x4   :  { %p116_p1 = scmp.lt.u32.totalorder %s112_s13, %s249_s0 }
   0x6   :  { %p118_p2 = pnand %p116_p1, %p113_p0 }
   0x8   :  { %121 = shalt.err (!%p118_p2)
}
   0x9   :  { %s122_s18 = scalar_lea.vmem %s16_s10, 256  ;;  %p127_p4 = scmp.lt.s32.totalorder %s16_s10, %s16_s10 }
   0xa   :  { %p123_p3 = scmp.ne.s32.totalorder %s16_s10, %s122_s18  ;;  %p128_p5 = scmp.lt.s32.totalorder %s122_s18, %s122_s18 }
   0xc   :  { %p129_p6 = por %p128_p5, %p127_p4 }
   0xe   :  { %p130_p7 = pnand %p129_p6, %p123_p3 }
  0x10   :  { %133 = shalt.err (!%p130_p7)
}
  0x11   :  { %s185_s19 = smov 128   ;;  %s186_s20 = smov 8  }
  0x12   :  { %21 = dma.hbm_to_vmem [thread:$0]  %s249_s0, 256, %s16_s10, [#allocation3], %s185_s19, %s185_s19, %s186_s20  }
  0x13   :  { %s187_s23 = smov [#allocation5]   ;;  %s134_s27 = scalar_lea.hbm %s250_s1, 256 }
  0x14   :  { %s27_s24 = sshll.u32 %s187_s23, 4  ;;  %p135_p8 = scmp.ne.s32.totalorder %s250_s1, %s134_s27  ;;  %s28_s24 = int_to_ptr.vmem [resolvable:$true] %s27_s24 }
  0x15   :  { %p138_p9 = scmp.lt.u32.totalorder %s134_s27, %s250_s1 }
  0x17   :  { %p140_p10 = pnand %p138_p9, %p135_p8 }
  0x19   :  { %143 = shalt.err (!%p140_p10)
}
  0x1a   :  { %s144_s4 = scalar_lea.vmem %s28_s24, 256  ;;  %p149_p12 = scmp.lt.s32.totalorder %s28_s24, %s28_s24 }
  0x1b   :  { %p145_p11 = scmp.ne.s32.totalorder %s28_s24, %s144_s4  ;;  %p150_p13 = scmp.lt.s32.totalorder %s144_s4, %s144_s4 }
  0x1d   :  { %p151_p0 = por %p150_p13, %p149_p12 }
  0x1f   :  { %p152_p1 = pnand %p151_p0, %p145_p11 }
  0x21   :  { %155 = shalt.err (!%p152_p1)
}
  0x22   :  { %33 = dma.hbm_to_vmem [thread:$0]  %s250_s1, 256, %s28_s24, [#allocation6], %s185_s19, %s185_s19, %s186_s20  }
  0x23   :  { %178 = dma.done.wait [#allocation3], 256  }
  0x24   :  { %179 = vsyncadd [#allocation3], 4294967040 }
  0x25   :  { %180 = dma.done.wait [#allocation6], 256  }
  0x26   :  { %181 = vsyncadd [#allocation6], 4294967040  ;;  %v46_v0 = vld [vmem:[#allocation2] sm:$0xff]  ;;  %v47_v1 = vld [vmem:[#allocation2 + $0x8] sm:$0xff]  ;;  %s188_s1 = smov [#allocation7]  }
  0x27   :  { %104 = vlog2.f32 %v46_v0  ;;  %v56_v2 = vsub.f32 1.0, %v46_v0  ;;  %v57_v3 = vsub.f32 1.0, %v47_v1  ;;  %v48_v5 = vld [vmem:[#allocation5] sm:$0xff]  ;;  %v49_v8 = vld [vmem:[#allocation5 + $0x8] sm:$0xff]  ;;  %s85_s6 = sshll.u32 %s188_s1, 4  ;;  %s86_s6 = int_to_ptr.vmem [resolvable:$true] %s85_s6 }
  0x28   :  { %106 = vlog2.f32 %v47_v1  ;;  %v68_v14 = vsub.f32 1.0, %v48_v5  ;;  %v69_v17 = vsub.f32 1.0, %v49_v8  ;;  %s156_s7 = scalar_lea.vmem %s86_s6, 256  ;;  %p161_p3 = scmp.lt.s32.totalorder %s86_s6, %s86_s6 }
  0x29   :  { %108 = vlog2.f32 %v56_v2  ;;  %p157_p2 = scmp.ne.s32.totalorder %s86_s6, %s156_s7  ;;  %p162_p4 = scmp.lt.s32.totalorder %s156_s7, %s156_s7 }
  0x2a   :  { %110 = vlog2.f32 %v57_v3 }
  0x2b   :  { %p163_p5 = por %p162_p4, %p161_p3 }
  0x2d   :  { %p164_p6 = pnand %p163_p5, %p157_p2 }
  0x31   :  { %v105_v4 = vpop.eup %104 }
  0x32   :  { %v107_v6 = vpop.eup %106  ;;  %v51_v7 = vmul.f32 0.6931472, %v105_v4 }
  0x33   :  { %v109_v9 = vpop.eup %108  ;;  %v53_v10 = vmul.f32 0.6931472, %v107_v6 }
  0x34   :  { %v111_v11 = vpop.eup %110  ;;  %v54_v12 = vmax.f32 %v51_v7, -100.0  ;;  %v59_v13 = vmul.f32 0.6931472, %v109_v9 }
  0x35   :  { %v55_v15 = vmax.f32 %v53_v10, -100.0  ;;  %v61_v16 = vmul.f32 0.6931472, %v111_v11 }
  0x36   :  { %v62_v18 = vmax.f32 %v59_v13, -100.0  ;;  %v66_v19 = vmul.f32 %v54_v12, %v48_v5 }
  0x37   :  { %v63_v20 = vmax.f32 %v61_v16, -100.0  ;;  %v67_v21 = vmul.f32 %v55_v15, %v49_v8 }
  0x38   :  { %v70_v22 = vmul.f32 %v68_v14, %v62_v18 }
  0x39   :  { %v71_v23 = vmul.f32 %v69_v17, %v63_v20 }
  0x3a   :  { %v72_v24 = vadd.f32 %v70_v22, %v66_v19 }
  0x3b   :  { %v73_v25 = vadd.f32 %v71_v23, %v67_v21 }
  0x3c   :  { %v74_v26 = vsub.f32 0.0, %v72_v24 }
  0x3d   :  { %v75_v27 = vsub.f32 0.0, %v73_v25 }
  0x3e   :  { %78 = vst [vmem:[#allocation7] sm:$0xff] %v74_v26 }
  0x3f   :  { %79 = vst [vmem:[#allocation7 + $0x8] sm:$0xff] %v75_v27 }
  0x40   :  { %167 = shalt.err (!%p164_p6)
}
  0x41   :  { %s168_s10 = scalar_lea.hbm %s251_s2, 256 }
  0x42   :  { %p169_p7 = scmp.ne.s32.totalorder %s251_s2, %s168_s10  ;;  %p172_p8 = scmp.lt.u32.totalorder %s168_s10, %s251_s2 }
  0x44   :  { %p174_p9 = pnand %p172_p8, %p169_p7 }
  0x46   :  { %177 = shalt.err (!%p174_p9)
}
  0x47   :  { %91 = dma.vmem_to_hbm [thread:$0]  %s86_s6, 256, %s251_s2, [#allocation4], %s185_s19, %s185_s19, %s186_s20  }
  0x48   :  { %182 = dma.done.wait [#allocation4], 256  }
  0x49   :  { %183 = vsyncadd [#allocation4], 4294967040 }
  0x4a   :  { %95 = vsyncpa [#allocation3], 1 }
  0x4b   :  { %96 = vsyncpa [#allocation6], 1 }
  0x4c   :  { %97 = vsyncpa [#allocation4], 1 }

</bundles_post_ra>
